<compile_context>
chip_gen: v7x
topology: tpu7x:2x2x1
jax: 0.10.0
libtpu: 0.0.40
codegen_flags: <defaults>
</compile_context>

<pallas_src>
import functools

import numpy as np
import jax
import jax.numpy as jnp
from jax import lax
from jax.experimental import pallas as pl
from jax.experimental.pallas import tpu as pltpu


def _round_up(x: int, m: int) -> int:
    return ((x + m - 1) // m) * m


@functools.lru_cache(maxsize=None)
def _scatter_tables(num_landmark: int, tile_n: int):
    """Per-output-lane tables (host-built, memoized, O(N^2) bytes).

    k_target[t, 0, l] = packed rel_column index feeding flat output position
                        c = t*tile_n + l   (K == "matches nothing" sentinel)
    sign[t, 0, l]     = +1 (lower triangle), -1 (upper triangle), 0 (diag/pad)
    """
    N = num_landmark
    K = N * (N - 1) // 2
    NN = N * N
    NN_pad = _round_up(NN, tile_n)
    num_t = NN_pad // tile_n

    c = np.arange(NN_pad, dtype=np.int64)
    i = c // N
    j = c % N
    k_low = i * (i - 1) // 2 + j          # destination of +rel_column (i > j)
    k_up = j * (j - 1) // 2 + i           # destination of -rel_column (i < j)
    k_target = np.where(i > j, k_low, np.where(i < j, k_up, K))
    sign = np.where(i > j, 1.0, np.where(i < j, -1.0, 0.0))
    # Padded flat positions (c >= N*N) must contribute zero.
    k_target = np.where(c < NN, k_target, K)
    sign = np.where(c < NN, sign, 0.0)

    k_target = k_target.astype(np.int32).reshape(num_t, 1, tile_n)
    sign = sign.astype(np.float32).reshape(num_t, 1, tile_n)
    return k_target, sign


def _rel_col2matrix_kernel(kt_ref, sg_ref, col_ref, out_ref, s_ref):
    # s_tile depends only on the lane tile t (= program_id(0)).  Grid order is
    # (t outer, b inner), so rebuild it only on the first batch step of each t
    # and reuse the cached VMEM copy for every other batch tile.
    @pl.when(pl.program_id(1) == 0)
    def _build_s_tile():
        K, tn = s_ref.shape
        kt = kt_ref[...].reshape(1, tn)     # packed index feeding each lane
        sg = sg_ref[...].reshape(1, tn)     # +1 / -1 / 0 per lane
        row_k = lax.broadcasted_iota(jnp.int32, (K, tn), 0)
        # Single compare + select (cheaper than two casts + subtract on v5e).
        s_ref[...] = jnp.where(row_k == kt, sg, jnp.zeros_like(sg))

    # (tile_b, K) @ (K, tile_n) on the MXU; each output is exactly +-x or 0.
    out_ref[...] = jnp.dot(
        col_ref[...], s_ref[...], preferred_element_type=jnp.float32
    ).astype(out_ref.dtype)


def rel_col2matrix(rel_column, num_landmark, *, tile_n=None, tile_b=None,
                   use_bf16_mxu=None):
    B, K = rel_column.shape
    N = num_landmark
    assert K == N * (N - 1) // 2, "rel_column has wrong packed size"
    NN = N * N

    in_dtype = jnp.dtype(rel_column.dtype)
    if use_bf16_mxu is None:
        # bf16 inputs: bf16 MXU is exact.  f32 inputs default to the exact
        # (slower) f32 MXU path; pass use_bf16_mxu=True to trade bf16 rounding
        # of the values for ~3-4x MXU throughput and half the s_tile VMEM.
        use_bf16_mxu = (in_dtype == jnp.bfloat16)
    compute_dtype = jnp.bfloat16 if (use_bf16_mxu or in_dtype == jnp.bfloat16) \
        else jnp.float32
    cs = jnp.dtype(compute_dtype).itemsize      # col / s_tile itemsize
    oi = in_dtype.itemsize                      # output itemsize

    # ---- generation-aware VMEM budgets ----------------------------------
    try:
        phys_vmem = int(pltpu.get_tpu_info().vmem_capacity_bytes)
    except Exception:
        phys_vmem = 64 * 1024 * 1024            # conservative (v7x-like)
    if phys_vmem >= 128 * 1024 * 1024:          # v5e / v6e
        vmem_limit = 64 * 1024 * 1024
        stile_budget = 8 * 1024 * 1024
    else:                                       # v7x: 64 MiB physical per TC
        vmem_limit = 40 * 1024 * 1024
        stile_budget = 4 * 1024 * 1024

    # ---- batch tile ------------------------------------------------------
    if tile_b is None:
        tile_b = min(256, _round_up(B, 8))      # 256 rows fill the MXU height
    tile_b = max(8, _round_up(tile_b, 8))
    # Keep the double-buffered col block within half the VMEM limit.
    while tile_b > 8 and 2 * tile_b * K * cs > vmem_limit // 2:
        tile_b = max(8, _round_up(tile_b // 2, 8))
    B_pad = _round_up(B, tile_b)
    num_b = B_pad // tile_b

    # ---- lane tile -------------------------------------------------------
    NN128 = _round_up(NN, 128)
    if tile_n is None:
        tn_from_stile = max(128, (stile_budget // (K * cs)) // 128 * 128)
        avail = vmem_limit - 2 * tile_b * K * cs - (2 << 20)      # slack
        per_n = K * cs + 2 * tile_b * oi + 64   # s_tile col + out bufs + tables
        tn_from_total = max(128, (max(avail, per_n) // per_n) // 128 * 128)
        tile_n = max(128, min(1024, tn_from_stile, tn_from_total, NN128))
        # Make sure small problems expose >=2 "parallel" t tiles so both v7x
        # TensorCores get work (one extra ~0.35us step on single-TC v5e/v6e).
        if num_b == 1 and tile_n > 128 and _round_up(NN, tile_n) // tile_n == 1:
            tile_n = max(128, _round_up((NN + 1) // 2, 128))
    tile_n = max(128, _round_up(tile_n, 128))

    # ---- inputs ----------------------------------------------------------
    col = rel_column
    if compute_dtype != in_dtype:
        col = col.astype(compute_dtype)
    if B_pad != B:
        col = jnp.pad(col, ((0, B_pad - B), (0, 0)))

    kt_np, sg_np = _scatter_tables(N, tile_n)
    num_t = kt_np.shape[0]
    NN_pad = num_t * tile_n
    kt = jnp.asarray(kt_np)                        # (num_t, 1, tile_n) int32
    sg = jnp.asarray(sg_np, dtype=compute_dtype)   # (num_t, 1, tile_n)

    cost = pl.CostEstimate(
        flops=2 * B_pad * K * NN_pad,
        transcendentals=0,
        bytes_accessed=(B_pad * K * cs            # rel_column
                        + NN_pad * (4 + cs)       # k_target + sign tables
                        + B_pad * NN_pad * oi),   # output
    )

    # TODO(synk): for very large N (K >~ 2000) add structure-aware K-slicing
    # of the lower-triangle contribution (two dots with pl.ds on the K axis)
    # to cut the O(N^4) MXU work; not needed at num_landmark=68 scale.
    out_flat = pl.pallas_call(
        _rel_col2matrix_kernel,
        out_shape=jax.ShapeDtypeStruct((B_pad, NN_pad), in_dtype),
        grid_spec=pltpu.PrefetchScalarGridSpec(
            num_scalar_prefetch=0,
            grid=(num_t, num_b),                  # t outer, b inner (s_tile reuse)
            in_specs=[
                pl.BlockSpec((1, 1, tile_n), lambda t, b: (t, 0, 0)),  # k_target
                pl.BlockSpec((1, 1, tile_n), lambda t, b: (t, 0, 0)),  # sign
                pl.BlockSpec((tile_b, K), lambda t, b: (b, 0)),        # rel_column
            ],
            out_specs=pl.BlockSpec((tile_b, tile_n), lambda t, b: (b, t)),
            scratch_shapes=[pltpu.VMEM((K, tile_n), compute_dtype)],   # cached s_tile
        ),
        compiler_params=pltpu.CompilerParams(
            dimension_semantics=("parallel", "arbitrary"),
            vmem_limit_bytes=vmem_limit,
        ),
        cost_estimate=cost,
    )(kt, sg, col)

    out = out_flat
    if B_pad != B or NN_pad != NN:
        out = out[:B, :NN]
    return out.reshape(B, N, N)


def _reference(rel_column, num_landmark):
    """Pure-JAX reference mirroring the PyTorch forward."""
    N = num_landmark
    ii, jj = np.tril_indices(N, k=-1)   # same row-major order as the torch mask
    out = jnp.zeros((rel_column.shape[0], N, N), rel_column.dtype)
    out = out.at[:, ii, jj].set(rel_column)
    out = out - jnp.swapaxes(out, -1, -2)
    return out


if __name__ == "__main__":
    key = jax.random.PRNGKey(0)
    k1, k2, k3 = jax.random.split(key, 3)

    # Case 1: module-consistent small shape (batch=2, num_landmark=16 -> K=120).
    B, N = 2, 16
    K = N * (N - 1) // 2
    rel_column = jax.random.normal(k1, (B, K), dtype=jnp.float32)
    out = jax.block_until_ready(rel_col2matrix(rel_column, N))
    ref = _reference(rel_column, N)
    assert out.shape == (B, N, N)
    np.testing.assert_allclose(np.asarray(out), np.asarray(ref),
                               rtol=1e-5, atol=1e-6)
    # Skew-symmetry is exact by construction (matches the module's assert).
    np.testing.assert_allclose(
        np.asarray(out), -np.asarray(out).swapaxes(-1, -2), rtol=0, atol=0)

    # Case 2: N*N not a multiple of 128 and ragged batch -> padding + 2 t tiles.
    B2, N2 = 3, 12
    K2 = N2 * (N2 - 1) // 2
    rel_column2 = jax.random.normal(k2, (B2, K2), dtype=jnp.float32)
    out2 = jax.block_until_ready(rel_col2matrix(rel_column2, N2))
    ref2 = _reference(rel_column2, N2)
    assert out2.shape == (B2, N2, N2)
    np.testing.assert_allclose(np.asarray(out2), np.asarray(ref2),
                               rtol=1e-5, atol=1e-6)

    # Case 3: multiple batch tiles (tile_b=8, B=16) -> exercises the cached
    # s_tile across the inner "arbitrary" batch axis.
    B3 = 16
    rel_column3 = jax.random.normal(k3, (B3, K), dtype=jnp.float32)
    out3 = jax.block_until_ready(rel_col2matrix(rel_column3, N, tile_b=8))
    ref3 = _reference(rel_column3, N)
    np.testing.assert_allclose(np.asarray(out3), np.asarray(ref3),
                               rtol=1e-5, atol=1e-6)

    # Case 4: bf16 MXU fast mode (exact +/- selection of bf16-rounded inputs).
    out4 = jax.block_until_ready(rel_col2matrix(rel_column, N, use_bf16_mxu=True))
    np.testing.assert_allclose(np.asarray(out4), np.asarray(ref),
                               rtol=1e-2, atol=1e-6)
    np.testing.assert_allclose(
        np.asarray(out4), -np.asarray(out4).swapaxes(-1, -2), rtol=0, atol=0)

    print("KERNEL_OK")
</pallas_src>

<mosaic_0001>
module attributes {stable_mosaic.version = 11 : i64} {
  func.func @_rel_col2matrix_kernel(%arg0: i32, %arg1: i32, %arg2: memref<1x1x128xi32, #tpu.memory_space<vmem>>, %arg3: memref<1x1x128xf32, #tpu.memory_space<vmem>>, %arg4: memref<8x120xf32, #tpu.memory_space<vmem>>, %arg5: memref<8x128xf32, #tpu.memory_space<vmem>>, %arg6: memref<120x128xf32, #tpu.memory_space<vmem>>) attributes {dimension_semantics = [#tpu.dimension_semantics<parallel>, #tpu.dimension_semantics<arbitrary>], iteration_bounds = array<i64: 2, 1>, scalar_prefetch = 0 : i64, scratch_operands = 1 : i64, tpu.core_type = #tpu.core_type<tc>, window_params = [{transform_indices = @transform_0, window_bounds = array<i64: 1, 1, 128>}, {transform_indices = @transform_1, window_bounds = array<i64: 1, 1, 128>}, {transform_indices = @transform_2, window_bounds = array<i64: 8, 120>}, {transform_indices = @transform_3, window_bounds = array<i64: 8, 128>}]} {
    %c0_i32 = arith.constant 0 : i32
    %0 = arith.cmpi eq, %arg1, %c0_i32 : i32
    %1 = arith.extui %0 : i1 to i32
    %c0_i32_0 = arith.constant 0 : i32
    %2 = arith.cmpi ne, %1, %c0_i32_0 : i32
    scf.if %2 {
      %c0_6 = arith.constant 0 : index
      %c0_7 = arith.constant 0 : index
      %c0_8 = arith.constant 0 : index
      %7 = vector.load %arg2[%c0_6, %c0_7, %c0_8] : memref<1x1x128xi32, #tpu.memory_space<vmem>>, vector<1x1x128xi32>
      %8 = vector.shape_cast %7 : vector<1x1x128xi32> to vector<1x128xi32>
      %c0_9 = arith.constant 0 : index
      %c0_10 = arith.constant 0 : index
      %c0_11 = arith.constant 0 : index
      %9 = vector.load %arg3[%c0_9, %c0_10, %c0_11] : memref<1x1x128xf32, #tpu.memory_space<vmem>>, vector<1x1x128xf32>
      %10 = vector.shape_cast %9 : vector<1x1x128xf32> to vector<1x128xf32>
      %11 = tpu.iota {dimensions = array<i32: 0>} : vector<120x128xi32>
      %12 = vector.broadcast %8 : vector<1x128xi32> to vector<120x128xi32>
      %13 = arith.cmpi eq, %11, %12 : vector<120x128xi32>
      %cst_12 = arith.constant 0.000000e+00 : f32
      %14 = vector.broadcast %cst_12 : f32 to vector<1x128xf32>
      %15 = vector.shape_cast %10 : vector<1x128xf32> to vector<1x128xf32>
      %16 = vector.broadcast %15 : vector<1x128xf32> to vector<120x128xf32>
      %17 = vector.shape_cast %14 : vector<1x128xf32> to vector<1x128xf32>
      %18 = vector.broadcast %17 : vector<1x128xf32> to vector<120x128xf32>
      %19 = arith.select %13, %16, %18 : vector<120x128xi1>, vector<120x128xf32>
      %c0_13 = arith.constant 0 : index
      %c0_14 = arith.constant 0 : index
      %20 = vector.load %arg6[%c0_13, %c0_14] : memref<120x128xf32, #tpu.memory_space<vmem>>, vector<120x128xf32>
      tpu.vector_store %arg6[%c0_13, %c0_14], %19 {strides = array<i32>} : memref<120x128xf32, #tpu.memory_space<vmem>>, vector<120x128xf32>,
    } else {
    }
    %c0 = arith.constant 0 : index
    %c0_1 = arith.constant 0 : index
    %3 = vector.load %arg4[%c0, %c0_1] : memref<8x120xf32, #tpu.memory_space<vmem>>, vector<8x120xf32>
    %c0_2 = arith.constant 0 : index
    %c0_3 = arith.constant 0 : index
    %4 = vector.load %arg6[%c0_2, %c0_3] : memref<120x128xf32, #tpu.memory_space<vmem>>, vector<120x128xf32>
    %cst = arith.constant dense<0.000000e+00> : vector<8x128xf32>
    %5 = tpu.matmul %3, %4, %cst {dimension_numbers = #tpu.dot_dimension_numbers<[1], [0], [0], [1], [0, 0, 1, 1], [], []>} : vector<8x120xf32>, vector<120x128xf32>, vector<8x128xf32> -> vector<8x128xf32>
    %c0_4 = arith.constant 0 : index
    %c0_5 = arith.constant 0 : index
    %6 = vector.load %arg5[%c0_4, %c0_5] : memref<8x128xf32, #tpu.memory_space<vmem>>, vector<8x128xf32>
    tpu.vector_store %arg5[%c0_4, %c0_5], %5 {strides = array<i32>} : memref<8x128xf32, #tpu.memory_space<vmem>>, vector<8x128xf32>,
    return
  }
  func.func @transform_0(%arg0: i32, %arg1: i32) -> (i32, i32, i32) {
    %c0_i32 = arith.constant 0 : i32
    %c0_i32_0 = arith.constant 0 : i32
    %c0_i32_1 = arith.constant 0 : i32
    return %arg0, %c0_i32, %c0_i32_0 : i32, i32, i32
  }
  func.func @transform_1(%arg0: i32, %arg1: i32) -> (i32, i32, i32) {
    %c0_i32 = arith.constant 0 : i32
    %c0_i32_0 = arith.constant 0 : i32
    %c0_i32_1 = arith.constant 0 : i32
    return %arg0, %c0_i32, %c0_i32_0 : i32, i32, i32
  }
  func.func @transform_2(%arg0: i32, %arg1: i32) -> (i32, i32) {
    %c0_i32 = arith.constant 0 : i32
    %c0_i32_0 = arith.constant 0 : i32
    return %arg1, %c0_i32 : i32, i32
  }
  func.func @transform_3(%arg0: i32, %arg1: i32) -> (i32, i32) {
    %c0_i32 = arith.constant 0 : i32
    return %arg1, %arg0 : i32, i32
  }
}

</mosaic_0001>

<bundles_post_ra>
// kernel: tpu_custom_call.1
= control target key start
LH: loop header
LB: loop body
LE: loop exit
PB: predicated region body
PF: predicated region fallthrough
CT: control target
= control target key end

     0   :  { %8 = vsyncpa [#allocation4], 0  ;;  %s1091_s0 = inlined_call_operand.hbm [shape: s32[2,1,128], index: 0, kind: input, shape index: {}]   ;;  %s1092_s1 = inlined_call_operand.vmem [shape: f32[2,1,128], index: 1, kind: input, shape index: {}]   ;;  %s1093_s2 = inlined_call_operand.hbm [shape: f32[8,120], index: 2, kind: input, shape index: {}]   ;;  %s1094_s3 = inlined_call_operand.hbm [shape: f32[8,256], index: 3, kind: output, shape index: {}]  }
   0x1   :  { %10 = vsyncpa [#allocation4 + $0x1], 0 }
   0x2   :  { %11 = vsyncpa [#allocation7], 0 }
   0x3   :  { %12 = vsyncpa [#allocation5], 0 }
   0x4   :  { %14 = vsyncpa [#allocation5 + $0x1], 0  ;;  %s869_s12 = smov 0   ;;  %s871_s13 = smov 0  }
   0x5   :  { %s873_s14 = smov 0   ;;  %s875_s15 = smov 0  }
   0x6   :  { %s877_s16 = smov 0   ;;  %s879_s17 = smov 0  }
   0x7 LB: > { %s513_s18 = sadd.s32 4294967295, %s841_s17   ;;  %s514_s19 = sadd.s32 4294967294, %s841_s17   ;;  %s841_s17 = sphi %s879_s17, %s20_s17   ;;  %s837_s16 = sphi %s877_s16, %s1119_s16   ;;  %s833_s15 = sphi %s875_s15, %s1118_s15   ;;  %s829_s14 = sphi %s873_s14, %s1117_s14   ;;  %s825_s13 = sphi %s871_s13, %s1116_s13   ;;  %s821_s12 = sphi %s869_s12, %s1115_s12  }
   0x8   : > { %p52_p0 = scmp.ne.s32.totalorder %s825_s13, %s821_s12  ;;  %p903_p1 = scmp.eq.s32.totalorder %s513_s18, 0 }
   0x9   : > { %p907_p2 = scmp.eq.s32.totalorder %s513_s18, 1  ;;  %p136_p3 = scmp.eq.s32.totalorder %s514_s19, 1 }
   0xa   : > { %s1099_s20 = scalar_select %p903_p1, 1, 0 }
   0xb   : > { %s1100_s21 = scalar_select %p907_p2, 1, 0 }
   0xc   : > { %p913_p4 = por %p903_p1, %p52_p0  ;;  %p515_p5 = scmp.ge.s32.totalorder %s841_s17, 1 }
   0xd   : > { %p918_p6 = por %p136_p3, %p52_p0  ;;  %p143_p7 = scmp.lt.s32.totalorder %s841_s17, 3 }
   0xe   : > { %s1101_s22 = scalar_select %p913_p4, 1, 0 }
   0xf   : > { %s1102_s23 = scalar_select %p918_p6, 1, 0 }
  0x10   : > { %p923_p8 = pnand %p515_p5, %p143_p7  ;;  %s843_s25 = smov [#allocation6]  }
  0x11   : > { %s158_s26 = sshll.u32 %s843_s25, 4  ;;  %s32_s28 = sadd.s32 1, %s837_s16  ;;  %s159_s26 = int_to_ptr.vmem [resolvable:$true] %s158_s26 }
  0x12   : > { %s1103_s24 = scalar_select %p923_p8, 1, 0 }
  0x13   : > { %p629_p10 = pneg %p923_p8  ;;  %s39_s29 = sadd.s32 1, %s829_s14 }
  0x14   : > { %p938_p12 = scmp.ge.s32.totalorder %s32_s28, 2  ;;  %s697_s6 = scalar_lea.hbm %s1093_s2, 128 }
  0x15   : > { %p932_p11 = pnand %p629_p10, %p903_p1  ;;  %p698_p13 = scmp.ne.s32.totalorder %s1093_s2, %s697_s6 }
  0x16   : > { %s1105_s30 = scalar_select %p938_p12, 1, 0 }
  0x17   : > { %p699_p0 = pneg %p932_p11  ;;  %p704_p7 = scmp.lt.u32.totalorder %s697_s6, %s1093_s2 }
  0x19   : > { %p700_p3 = pnand %p699_p0, %p698_p13 }
  0x1b   : > { %p701_p5 = pneg %p700_p3 }
  0x1d   : > { %p706_p10 = pnand %p704_p7, %p701_p5 }
  0x1f   : > { %709 = shalt.err (!%p706_p10)
}
  0x20   : > { %s710_s11 = scalar_lea.vmem %s159_s26, 128  ;;  %p718_p4 = scmp.lt.s32.totalorder %s159_s26, %s159_s26 }
  0x21   : > { %p711_p9 = scmp.ne.s32.totalorder %s159_s26, %s710_s11  ;;  %p719_p8 = scmp.lt.s32.totalorder %s710_s11, %s710_s11 }
  0x23   : > { %p713_p6 = pnand %p711_p9, %p699_p0  ;;  %p720_p2 = por %p719_p8, %p718_p4 }
  0x25   : > { %p714_p1 = pneg %p713_p6 }
  0x27   : > { %p721_p12 = pnand %p720_p2, %p714_p1 }
  0x29   : > { %724 = shalt.err (!%p721_p12)
}
  0x2a   : > { %632 = dma.hbm_to_vmem [thread:$0]  (!%p932_p11), %s1093_s2, 128, %s159_s26, [#allocation7]  }
  0x2b   : > { %p1106_p4 = scmp.ne.s32.totalorder %s1105_s30, 0  ;;  %p46_p1 = scmp.ne.s32.totalorder %s829_s14, %s825_s13 }
  0x2c   : > { %p47_p2 = scmp.eq.s32.totalorder %s841_s17, 0  ;;  %p642_p6 = scmp.lt.s32.totalorder %s841_s17, 2 }
  0x2d   : > { %s1121_s28 = smov (%p1106_p4, %s32_s28), 0  ;;  %p1107_p12 = scmp.ne.s32.totalorder %s1100_s21, 0 }
  0x2e   : > { %s36_s25 = ssub.s32 %s837_s16, %s1121_s28  ;;  %p48_p9 = por %p47_p2, %p46_p1 }
  0x2f   : > { %p37_p8 = scmp.eq.s32.totalorder %s36_s25, 0  ;;  %p970_p13 = por %p1107_p12, %p46_p1 }
  0x30   : > { %s169_s4 = sand.u32 1, %s829_s14   ;;  %s518_s26 = sshll.u32 %s837_s16, 4 }
  0x31   : > { %s978_s5 = scalar_select %p37_p8, %s829_s14, %s39_s29  }
  0x32   : > { %s172_s30 = scalar_lea.vmem [#allocation3], %s169_s4  ;;  %s984_s9 = scalar_lea.hbm %s1091_s0, %s518_s26 }
  0x33   : > { %s179_s6 = sshll.u32 %s172_s30, 4  ;;  %p988_p11 = pnand %p642_p6, %p48_p9  ;;  %s986_s6 = int_to_ptr.vmem [resolvable:$true] %s179_s6 }
  0x34   : > { %s170_s29 = scalar_lea.sflag [#allocation4], %s169_s4  ;;  %s725_s10 = scalar_lea.hbm %s984_s9, 16 }
  0x35   : > { %p726_p0 = scmp.ne.s32.totalorder %s984_s9, %s725_s10  ;;  %p727_p3 = pneg %p988_p11 }
  0x36   : > { %s730_s19 = scalar_lea.hbm %s1091_s0, 32  ;;  %p731_p10 = scmp.lt.u32.totalorder %s984_s9, %s1091_s0 }
  0x37   : > { %p728_p5 = pnand %p727_p3, %p726_p0  ;;  %p732_p4 = scmp.lt.u32.totalorder %s730_s19, %s725_s10 }
  0x38   : > { %p734_p2 = scmp.lt.u32.totalorder %s725_s10, %s984_s9 }
  0x39   : > { %p729_p7 = pneg %p728_p5  ;;  %p733_p1 = por %p732_p4, %p731_p10 }
  0x3b   : > { %p735_p6 = por %p734_p2, %p733_p1 }
  0x3d   : > { %p736_p8 = pnand %p735_p6, %p729_p7 }
  0x3f   : > { %739 = shalt.err (!%p736_p8)
}
  0x40   : > { %s740_s4 = scalar_lea.vmem %s986_s6, 16  ;;  %s844_s30 = smov [#allocation3]  }
  0x41   : > { %p741_p9 = scmp.ne.s32.totalorder %s986_s6, %s740_s4  ;;  %s745_s7 = sshll.u32 %s844_s30, 4  ;;  %s746_s7 = int_to_ptr.vmem [resolvable:$false] %s745_s7 }
  0x42   : > { %s747_s8 = scalar_lea.vmem %s746_s7, 32  ;;  %p748_p5 = scmp.lt.s32.totalorder %s986_s6, %s746_s7 }
  0x43   : > { %p743_p12 = pnand %p741_p9, %p727_p3  ;;  %p749_p10 = scmp.lt.s32.totalorder %s747_s8, %s740_s4 }
  0x45   : > { %p744_p0 = pneg %p743_p12  ;;  %p750_p4 = por %p749_p10, %p748_p5 }
  0x47   : > { %p751_p1 = pnand %p750_p4, %p744_p0 }
  0x49   : > { %754 = shalt.err (!%p751_p1)
}
  0x4a   : > { %636 = dma.hbm_to_vmem [thread:$0]  (!%p988_p11), %s984_s9, 16, %s986_s6, %s170_s29  }
  0x4b   : > { %p1110_p7 = scmp.ne.s32.totalorder %s1103_s24, 0 }
  0x4c   : > { %s1020_s10 = sand.u32 (!%p1110_p7), 1, %s825_s13   ;;  %p1111_p3 = scmp.ne.s32.totalorder (!%p1110_p7), %s1101_s22, 0 }
  0x4d   : > { %194 = sbr.rel (%p1110_p7) target bundleno = 351 (0x15f), region = 32  ;;  %s197_s11 = scalar_lea.sflag (!%p1110_p7), [#allocation4], %s1020_s10 }
  0x4e   : > { %s199_s18 = scalar_lea.vmem (!%p1110_p7), [#allocation3], %s1020_s10 }
  0x54   : > { %808 = dma.done.wait (%p1111_p3), %s197_s11, 16  }
  0x55   : > { %810 = vsyncadd (%p1111_p3), %s197_s11, 4294967280  ;;  %p1112_p2 = scmp.ne.s32.totalorder %s1099_s20, 0 }
  0x57   : > { %812 = dma.done.wait (%p1112_p2), [#allocation7], 128  }
  0x58   : > { %814 = vsyncadd (%p1112_p2), [#allocation7], 4294967168  ;;  %p228_p11 = scmp.lt.s32.totalorder %s833_s15, 1  ;;  %v237_v0 = vlaneseq  ;;  %v845_v1 = vmov 0.0|0.0   ;;  %vm846_vm0 = vmmov 0   ;;  %v847_v2 = vmov 0.0  }
  0x59   : > { %593 = vmatprep.subr.bf16.mxu0 %v845_v1  ;;  %590 = vmatprep.mubr.msk.f32.mxu0 %vm846_vm0, %v847_v2  ;;  %v522_v7 = vld [vmem:[%s199_s18] ss:$0 sm:$0xff]  ;;  %v308_v21 = vld [vmem:[#allocation6] sm:$0xff]  ;;  %s521_s20 = sshll.u32 %s1020_s10, 3  ;;  %s526_s19 = sshll.u32 %s833_s15, 7 }
  0x5a   : > { %s229_s24 = scalar_select %p228_p11, %s833_s15, 1  ;;  %v238_v3 = vshrl.u32 %v237_v0, 7 }
  0x5b   : > { %s227_s21 = scalar_lea.vmem [#allocation8], %s521_s20  ;;  %s1044_s4 = scalar_lea.hbm %s1094_s3, %s526_s19 }
  0x5c   : > { %s230_s9 = scalar_lea.vmem %s1092_s1, %s229_s24  ;;  %v239_v4 = vadd.s32 8, %v238_v3  ;;  %v240_v5 = vadd.s32 16, %v238_v3  ;;  %v241_v6 = vadd.s32 24, %v238_v3  ;;  %v242_v9 = vadd.s32 32, %v238_v3  ;;  %s415_s29 = sshll.u32 %s227_s21, 4  ;;  %s1039_s29 = int_to_ptr.vmem [resolvable:$true] %s415_s29 }
  0x5d   : > { %v523_v8 = vld [vmem:[%s230_s9] ss:$0 sm:$0xff]  ;;  %v243_v10 = vadd.s32 40, %v238_v3  ;;  %vm257_vm1 = vcmp.eq.s32.totalorder %v238_v3, %v522_v7  ;;  %v244_v12 = vadd.s32 48, %v238_v3  ;;  %v245_v13 = vadd.s32 56, %v238_v3  ;;  %s400_s30 = scalar_lea.sflag [#allocation5], %s1020_s10 }
  0x5e   : > { %vm258_vm2 = vcmp.eq.s32.totalorder %v239_v4, %v522_v7  ;;  %v594_v11 = vpack.c.bf16 %v523_v8, %v523_v8  ;;  %vm259_vm3 = vcmp.eq.s32.totalorder %v240_v5, %v522_v7  ;;  %vm260_vm5 = vcmp.eq.s32.totalorder %v241_v6, %v522_v7  ;;  %s755_s7 = scalar_lea.vmem %s1039_s29, 128  ;;  %s848_s15 = smov [#allocation8]  }
  0x5f   : > { %vm595_vm4 = vmpackc.low %vm258_vm2, %vm257_vm1  ;;  %vm261_vm7 = vcmp.eq.s32.totalorder %v242_v9, %v522_v7  ;;  %vm262_vm8 = vcmp.eq.s32.totalorder %v243_v10, %v522_v7  ;;  %vm263_vm10 = vcmp.eq.s32.totalorder %v244_v12, %v522_v7  ;;  %vm264_vm11 = vcmp.eq.s32.totalorder %v245_v13, %v522_v7  ;;  %p756_p6 = scmp.ne.s32.totalorder %s1039_s29, %s755_s7  ;;  %s759_s8 = sshll.u32 %s848_s15, 4  ;;  %s760_s8 = int_to_ptr.vmem [resolvable:$false] %s759_s8 }
  0x60   : > { %596 = vmatpush3.bf16.msk.msra.mxu0 %vm595_vm4, %v594_v11  ;;  %vm599_vm6 = vmpackc.low %vm260_vm5, %vm259_vm3  ;;  %v246_v14 = vadd.s32 64, %v238_v3  ;;  %v247_v15 = vadd.s32 72, %v238_v3  ;;  %v248_v16 = vadd.s32 80, %v238_v3  ;;  %v249_v17 = vadd.s32 88, %v238_v3  ;;  %s761_s11 = scalar_lea.vmem %s760_s8, 256  ;;  %p762_p12 = scmp.lt.s32.totalorder %s1039_s29, %s760_s8 }
  0x61   : > { %597 = vmatprep.subr.bf16.mxu0 %v845_v1  ;;  %vm603_vm9 = vmpackc.low %vm262_vm8, %vm261_vm7  ;;  %v250_v18 = vadd.s32 96, %v238_v3  ;;  %v251_v19 = vadd.s32 104, %v238_v3  ;;  %v252_v20 = vadd.s32 112, %v238_v3  ;;  %vm324_vm7 = vcmask 982016   ;;  %p757_p8 = pnand %p756_p6, %p970_p13  ;;  %p763_p0 = scmp.lt.s32.totalorder %s761_s11, %s755_s7 }
  0x62   : > { %vm607_vm12 = vmpackc.low %vm264_vm11, %vm263_vm10  ;;  %vm265_vm13 = vcmp.eq.s32.totalorder %v246_v14, %v522_v7  ;;  %vm266_vm14 = vcmp.eq.s32.totalorder %v247_v15, %v522_v7  ;;  %vm267_vm0 = vcmp.eq.s32.totalorder %v248_v16, %v522_v7  ;;  %vm268_vm1 = vcmp.eq.s32.totalorder %v249_v17, %v522_v7 }
  0x63   : > { %vm611_vm15 = vmpackc.low %vm266_vm14, %vm265_vm13  ;;  %vm269_vm3 = vcmp.eq.s32.totalorder %v250_v18, %v522_v7  ;;  %vm270_vm4 = vcmp.eq.s32.totalorder %v251_v19, %v522_v7  ;;  %p758_p9 = pneg %p757_p8  ;;  %p764_p5 = por %p763_p0, %p762_p12 }
  0x64   : > { %600 = vmatpush3.bf16.msk.msra.mxu0 %vm599_vm6, %v594_v11  ;;  %vm615_vm2 = vmpackc.low %vm268_vm1, %vm267_vm0  ;;  %vm271_vm6 = vcmp.eq.s32.totalorder %v252_v20, %v522_v7 }
  0x65   : > { %601 = vmatprep.subr.bf16.mxu0 %v845_v1  ;;  %vm619_vm5 = vmpackc.low %vm270_vm4, %vm269_vm3  ;;  %p765_p10 = pnand %p764_p5, %p758_p9 }
  0x68   : > { %604 = vmatpush3.bf16.msk.msra.mxu0 %vm603_vm9, %v594_v11 }
  0x69   : > { %605 = vmatprep.subr.bf16.mxu0 %v845_v1 }
  0x6c   : > { %608 = vmatpush3.bf16.msk.msra.mxu0 %vm607_vm12, %v594_v11 }
  0x6d   : > { %609 = vmatprep.subr.bf16.mxu0 %v845_v1 }
  0x70   : > { %612 = vmatpush3.bf16.msk.msra.mxu0 %vm611_vm15, %v594_v11 }
  0x71   : > { %613 = vmatprep.subr.bf16.mxu0 %v845_v1 }
  0x74   : > { %616 = vmatpush3.bf16.msk.msra.mxu0 %vm615_vm2, %v594_v11 }
  0x75   : > { %617 = vmatprep.subr.bf16.mxu0 %v845_v1 }
  0x78   : > { %620 = vmatpush3.bf16.msk.msra.mxu0 %vm619_vm5, %v594_v11 }
  0x79   : > { %588 = vmatprep.subr.mxu0 %v847_v2 }
  0x7c   : > { %589 = vmatpush3.msk.msra.mxu0 %vm271_vm6, %v523_v8 }
  0x7d   : > { %591 = vmatmul.mubr.msk.f32.vlgmr.msra.gmra.mrb[0].mxu0 %vm324_vm7, %v308_v21 }
 0x150   : > { %v394_v22 = vpop.f32.mrb[0].mxu0 }
 0x151   : > { %398 = vst [vmem:[%s227_s21] sm:$0xff] %v394_v22  ;;  %v592_v23 = vpop.f32.mrb[1].mxu0 }
 0x152   : > { %768 = shalt.err (!%p765_p10)
}
 0x153   : > { %s769_s10 = scalar_lea.hbm %s1044_s4, 128  ;;  %s773_s6 = scalar_lea.hbm %s1094_s3, 256 }
 0x154   : > { %p770_p4 = scmp.ne.s32.totalorder %s1044_s4, %s769_s10  ;;  %p774_p3 = scmp.lt.u32.totalorder %s1044_s4, %s1094_s3 }
 0x155   : > { %p775_p2 = scmp.lt.u32.totalorder %s773_s6, %s769_s10  ;;  %p777_p6 = scmp.lt.u32.totalorder %s769_s10, %s1044_s4 }
 0x156   : > { %p771_p1 = pnand %p770_p4, %p970_p13 }
 0x157   : > { %p776_p11 = por %p775_p2, %p774_p3 }
 0x158   : > { %p772_p7 = pneg %p771_p1 }
 0x159   : > { %p778_p8 = por %p777_p6, %p776_p11 }
 0x15b   : > { %p779_p9 = pnand %p778_p8, %p772_p7 }
 0x15d   : > { %782 = shalt.err (!%p779_p9)
}
 0x15e   : > { %627 = dma.vmem_to_hbm [thread:$0]  (%p970_p13), %s1039_s29, 128, %s1044_s4, %s400_s30  }
 0x15f PF: > { %s427_s20 = sand.u32 1, %s821_s12   ;;  %p1113_p12 = scmp.ne.s32.totalorder %s1102_s23, 0 }
 0x160   : > { %p1114_p0 = scmp.ge.s32.totalorder %s841_s17, 2  ;;  %s428_s21 = scalar_lea.sflag [#allocation5], %s427_s20 }
 0x162   : > { %p638_p5 = pnand %p1114_p0, %p1113_p12 }
 0x164   : > { %816 = dma.done.wait (!%p638_p5), %s428_s21, 128  }
 0x165   : > { %818 = vsyncadd (!%p638_p5), %s428_s21, 4294967168  ;;  %s20_s17 = sadd.s32 1, %s841_s17   ;;  %s1115_s12 = smov %s825_s13 }
 0x166   : > { %p17_p10 = scmp.ge.s32.totalorder %s20_s17, 4   ;;  %s1116_s13 = smov %s829_s14 }
 0x167   : > { %s1117_s14 = smov %s978_s5  ;;  %s1118_s15 = smov %s837_s16 }
 0x168   : > { %s1119_s16 = smov %s1121_s28  ;;  %19 = sbr.rel (!%p17_p10) target bundleno = 7 (0x7), region = 89 }
 0x16f   :  { %433 = vsyncpa [#allocation4], 1 }
 0x170   :  { %435 = vsyncpa [#allocation4 + $0x1], 1 }
 0x171   :  { %436 = vsyncpa [#allocation7], 1 }
 0x172   :  { %437 = vsyncpa [#allocation5], 1 }
 0x173   :  { %439 = vsyncpa [#allocation5 + $0x1], 1 }

</bundles_post_ra>
